<compile_context>
chip_gen: v7x
topology: tpu7x:2x2x1
jax: 0.10.0
libtpu: 0.0.40
codegen_flags: <defaults>
</compile_context>

<pallas_src>
import functools

import jax
import jax.numpy as jnp
from jax.experimental import pallas as pl
from jax.experimental.pallas import tpu as pltpu


N_ENC = 6            # encoder Linear+ReLU layers (1 input layer + 5 hidden)
N_DEC = 6            # decoder Linear layers (5 hidden+ReLU, 1 output+Sigmoid)
N_HID = 10           # the ten identical [h, h] hidden layers (5 enc + 5 dec)
N_BIAS_ROWS = 16     # 14 biases padded to 16 rows in the packed bias table
N_STAGES = 13        # 0: first | 1..5: enc hidden | 6: bottleneck | 7..11: dec hidden | 12: last
ZB = 128             # bottleneck lane block: mu at lanes [0,64), logvar at [64,128)
LOGVAR_OFF = ZB // 2
SUBLANE = 8
LANE = 128


def _round_up(x, m):
    return ((x + m - 1) // m) * m


# ----------------------------------------------------------------------------
# Fused kernel: one grid step per layer stage; activation stays in VMEM scratch.
# ----------------------------------------------------------------------------
def _vae_stage_kernel(x_ref, eps_ref, w_first_ref, w_hid_ref, w12_ref, w3_ref,
                      w_last_ref, b_ref, recon_ref, mulv_ref, h_scr,
                      *, h_pad, d_pad):
    s = pl.program_id(0)

    def bias(row, width):
        # One row of the packed bias table, (1, width) f32.
        return b_ref[pl.ds(row, 1), pl.ds(0, width)]

    # ---- stage 0: first encoder layer  h = relu(x @ W0 + b0) ----
    @pl.when(s == 0)
    def _():
        y = jnp.dot(x_ref[...], w_first_ref[...],
                    preferred_element_type=jnp.float32)
        y = y + bias(0, h_pad)
        h_scr[...] = jnp.maximum(y, 0.0).astype(h_scr.dtype)

    # ---- stages 1..5 / 7..11: the ten [h,h] hidden layers (pipelined DMA) ----
    @pl.when((s >= 1) & (s <= 11) & (s != 6))
    def _():
        brow = jnp.where(s <= 5, s, s + 1)        # packed-bias row for this layer
        y = jnp.dot(h_scr[...], w_hid_ref[0],
                    preferred_element_type=jnp.float32)
        y = y + bias(brow, h_pad)
        h_scr[...] = jnp.maximum(y, 0.0).astype(h_scr.dtype)

    # ---- stage 6: bottleneck = merged fc1||fc2, reparameterize, fc3 ----
    @pl.when(s == 6)
    def _():
        mulv = jnp.dot(h_scr[...], w12_ref[...],
                       preferred_element_type=jnp.float32)
        mulv = mulv + bias(6, ZB)
        mulv_ref[...] = mulv.astype(mulv_ref.dtype)
        mu = mulv[:, :LOGVAR_OFF]
        logvar = mulv[:, LOGVAR_OFF:]
        z = mu + jnp.exp(0.5 * logvar) * eps_ref[...]      # exp -> EUP slot
        d = jnp.dot(z.astype(w3_ref.dtype), w3_ref[...],
                    preferred_element_type=jnp.float32)
        d = d + bias(7, h_pad)                             # fc3: no activation
        h_scr[...] = d.astype(h_scr.dtype)

    # ---- stage 12: last decoder layer + sigmoid ----
    @pl.when(s == N_STAGES - 1)
    def _():
        y = jnp.dot(h_scr[...], w_last_ref[...],
                    preferred_element_type=jnp.float32)
        y = y + bias(13, d_pad)
        recon_ref[...] = jax.nn.sigmoid(y).astype(recon_ref.dtype)


# ----------------------------------------------------------------------------
# Wrapper: pad to tile-friendly shapes, one pallas_call over the stage grid.
# ----------------------------------------------------------------------------
def vae_forward_fused(packed, x, eps, *, image_size, z_dim):
    w_first, w_hid, w12, w3, w_last, b_all = packed
    d_pad, h_pad = w_first.shape
    B = x.shape[0]
    m_pad = _round_up(max(B, 1), SUBLANE)

    x_p = jnp.zeros((m_pad, d_pad), jnp.bfloat16)
    x_p = x_p.at[:B, :image_size].set(x.astype(jnp.bfloat16))
    eps_p = jnp.zeros((m_pad, LOGVAR_OFF), jnp.float32).at[:B, :z_dim].set(eps)

    def full(a):
        return pl.BlockSpec(a.shape, lambda s, nd=a.ndim: (0,) * nd)

    # Hidden-weight stack: the stage->layer index map drives per-layer prefetch.
    # (stage 6 maps to row 5 so the first decoder weight is fetched one stage
    #  early; stages 0/12 repeat the neighbouring index -> no extra DMA.)
    hid_spec = pl.BlockSpec(
        (1, h_pad, h_pad),
        lambda s: (jnp.maximum(jnp.minimum(jnp.where(s <= 6, s - 1, s - 2),
                                           N_HID - 1), 0), 0, 0))

    in_specs = [full(x_p), full(eps_p), full(w_first), hid_spec,
                full(w12), full(w3), full(w_last), full(b_all)]
    out_shape = (jax.ShapeDtypeStruct((m_pad, d_pad), jnp.float32),
                 jax.ShapeDtypeStruct((m_pad, ZB), jnp.float32))
    out_specs = [pl.BlockSpec((m_pad, d_pad), lambda s: (0, 0)),
                 pl.BlockSpec((m_pad, ZB), lambda s: (0, 0))]

    # Explicit VMEM budget: double-buffered I/O blocks + scratch + headroom.
    def nbytes(a):
        return int(a.size) * a.dtype.itemsize

    io_bytes = (nbytes(x_p) + nbytes(eps_p) + nbytes(w_first)
                + h_pad * h_pad * 2            # one hidden-layer block (bf16)
                + nbytes(w12) + nbytes(w3) + nbytes(w_last) + nbytes(b_all)
                + m_pad * d_pad * 4 + m_pad * ZB * 4)      # outputs (f32)
    scratch_bytes = m_pad * h_pad * 2
    vmem_limit = int(min(2 * io_bytes + scratch_bytes + (16 << 20), 127 << 20))

    recon_p, mulv_p = pl.pallas_call(
        functools.partial(_vae_stage_kernel, h_pad=h_pad, d_pad=d_pad),
        out_shape=out_shape,
        grid_spec=pltpu.PrefetchScalarGridSpec(
            num_scalar_prefetch=0,
            grid=(N_STAGES,),
            in_specs=in_specs,
            out_specs=out_specs,
            scratch_shapes=[pltpu.VMEM((m_pad, h_pad), jnp.bfloat16)]),
        compiler_params=pltpu.CompilerParams(
            dimension_semantics=("arbitrary",),
            vmem_limit_bytes=vmem_limit),
    )(x_p, eps_p, w_first, w_hid, w12, w3, w_last, b_all)

    recon = recon_p[:B, :image_size]
    mu = mulv_p[:B, :z_dim]
    logvar = mulv_p[:B, LOGVAR_OFF:LOGVAR_OFF + z_dim]
    return recon, mu, logvar


# ----------------------------------------------------------------------------
# Parameters (PyTorch nn.Linear default init) + packing for the kernel.
# ----------------------------------------------------------------------------
def init_linear_params(key, fan_in, fan_out):
    kw, kb = jax.random.split(key)
    bound = 1.0 / jnp.sqrt(jnp.asarray(fan_in, jnp.float32))
    w = jax.random.uniform(kw, (fan_in, fan_out), jnp.float32, -bound, bound)
    b = jax.random.uniform(kb, (fan_out,), jnp.float32, -bound, bound)
    return w, b


def init_vae_params(key, image_size, h_dim, z_dim):
    keys = jax.random.split(key, 15)
    enc_dims = [(image_size, h_dim)] + [(h_dim, h_dim)] * (N_ENC - 1)
    enc = [init_linear_params(keys[i], di, do)
           for i, (di, do) in enumerate(enc_dims)]
    fc1 = init_linear_params(keys[6], h_dim, z_dim)
    fc2 = init_linear_params(keys[7], h_dim, z_dim)
    fc3 = init_linear_params(keys[8], z_dim, h_dim)
    dec_dims = [(h_dim, h_dim)] * (N_DEC - 1) + [(h_dim, image_size)]
    dec = [init_linear_params(keys[9 + i], di, do)
           for i, (di, do) in enumerate(dec_dims)]
    return dict(encoder=enc, fc1=fc1, fc2=fc2, fc3=fc3, decoder=dec)


def pack_params(params, image_size, h_dim, z_dim):
    """Pack into the kernel's inputs.

    Weights -> bf16, lane/sublane padded (h_dim -> multiple of 128, image_size
    -> multiple of 128); the ten [h,h] hidden layers stacked into one tensor;
    fc1/fc2 merged into a single 128-lane block (mu lanes [0,z), logvar lanes
    [64,64+z)); all 14 biases concatenated into one f32 table.  Zero padding
    keeps the math exact: padded mu/logvar lanes are 0, exp(0)=1 multiplies eps
    lanes that are 0, and all padded K rows / N cols are 0.
    """
    assert z_dim <= LOGVAR_OFF
    d_pad = _round_up(image_size, LANE)
    h_pad = _round_up(h_dim, LANE)
    max_w = max(d_pad, h_pad, ZB)

    w0, b0 = params["encoder"][0]
    w_first = jnp.zeros((d_pad, h_pad), jnp.float32)
    w_first = w_first.at[:image_size, :h_dim].set(w0)

    hid = params["encoder"][1:] + params["decoder"][:N_DEC - 1]
    w_hid = jnp.zeros((N_HID, h_pad, h_pad), jnp.float32)
    for i, (w, _) in enumerate(hid):
        w_hid = w_hid.at[i, :h_dim, :h_dim].set(w)

    (w1, b1), (w2, b2) = params["fc1"], params["fc2"]
    w12 = jnp.zeros((h_pad, ZB), jnp.float32)
    w12 = w12.at[:h_dim, :z_dim].set(w1)
    w12 = w12.at[:h_dim, LOGVAR_OFF:LOGVAR_OFF + z_dim].set(w2)

    w3, b3 = params["fc3"]
    w3p = jnp.zeros((LOGVAR_OFF, h_pad), jnp.float32).at[:z_dim, :h_dim].set(w3)

    wl, bl = params["decoder"][-1]
    w_last = jnp.zeros((h_pad, d_pad), jnp.float32)
    w_last = w_last.at[:h_dim, :image_size].set(wl)

    # All 14 biases in ONE packed f32 table (rows 14/15 unused padding).
    b_all = jnp.zeros((N_BIAS_ROWS, max_w), jnp.float32)
    b_all = b_all.at[0, :h_dim].set(b0)
    for i, (_, b) in enumerate(params["encoder"][1:]):           # rows 1..5
        b_all = b_all.at[1 + i, :h_dim].set(b)
    b_all = b_all.at[6, :z_dim].set(b1)
    b_all = b_all.at[6, LOGVAR_OFF:LOGVAR_OFF + z_dim].set(b2)
    b_all = b_all.at[7, :h_dim].set(b3)
    for i, (_, b) in enumerate(params["decoder"][:N_DEC - 1]):   # rows 8..12
        b_all = b_all.at[8 + i, :h_dim].set(b)
    b_all = b_all.at[13, :image_size].set(bl)

    bf = lambda a: a.astype(jnp.bfloat16)
    return (bf(w_first), bf(w_hid), bf(w12), bf(w3p), bf(w_last), b_all)


# ----------------------------------------------------------------------------
# Pure-JAX reference (f32) for a correctness sanity check.
# ----------------------------------------------------------------------------
def ref_forward(params, x, eps):
    h = x
    for w, b in params["encoder"]:
        h = jax.nn.relu(h @ w + b)
    mu = h @ params["fc1"][0] + params["fc1"][1]
    logvar = h @ params["fc2"][0] + params["fc2"][1]
    z = mu + jnp.exp(0.5 * logvar) * eps
    d = z @ params["fc3"][0] + params["fc3"][1]
    for w, b in params["decoder"][:-1]:
        d = jax.nn.relu(d @ w + b)
    w, b = params["decoder"][-1]
    return jax.nn.sigmoid(d @ w + b), mu, logvar


# ----------------------------------------------------------------------------
# Main
# ----------------------------------------------------------------------------
if __name__ == "__main__":
    # Small synthetic shapes consistent with the module's structure.
    # (Real module: image_size=96*96=9216, h_dim=1000, z_dim=4. Scaled down:
    #  image_size=16*16=256, h_dim=200 (exercises the 128-pad path like 1000
    #  does), z_dim=4, batch=2.)
    BATCH = 2
    IMAGE_SIZE = 16 * 16
    H_DIM = 200
    Z_DIM = 4

    root = jax.random.PRNGKey(0)
    k_params, k_x, k_eps = jax.random.split(root, 3)

    params = init_vae_params(k_params, IMAGE_SIZE, H_DIM, Z_DIM)
    packed = pack_params(params, IMAGE_SIZE, H_DIM, Z_DIM)
    x = jax.random.uniform(k_x, (BATCH, IMAGE_SIZE), jnp.float32)   # flat images
    eps = jax.random.normal(k_eps, (BATCH, Z_DIM), jnp.float32)     # reparam noise

    fwd = jax.jit(functools.partial(vae_forward_fused,
                                    image_size=IMAGE_SIZE, z_dim=Z_DIM))
    recon, mu, logvar = fwd(packed, x, eps)
    jax.block_until_ready((recon, mu, logvar))

    assert recon.shape == (BATCH, IMAGE_SIZE)
    assert mu.shape == (BATCH, Z_DIM)
    assert logvar.shape == (BATCH, Z_DIM)
    assert bool(jnp.all(jnp.isfinite(recon)))
    assert bool(jnp.all((recon >= 0.0) & (recon <= 1.0)))  # sigmoid output range

    # Loose tolerance: kernel uses bf16 matmul inputs with f32 accumulation.
    r_ref, mu_ref, lv_ref = ref_forward(params, x, eps)
    assert float(jnp.max(jnp.abs(recon - r_ref))) < 0.1
    assert float(jnp.max(jnp.abs(mu - mu_ref))) < 0.1
    assert float(jnp.max(jnp.abs(logvar - lv_ref))) < 0.1

    print("KERNEL_OK")
</pallas_src>

<mosaic_0001>
module attributes {stable_mosaic.version = 11 : i64} {
  func.func @_vae_stage_kernel(%arg0: i32, %arg1: memref<8x256xbf16, #tpu.memory_space<vmem>>, %arg2: memref<8x64xf32, #tpu.memory_space<vmem>>, %arg3: memref<256x256xbf16, #tpu.memory_space<vmem>>, %arg4: memref<1x256x256xbf16, #tpu.memory_space<vmem>>, %arg5: memref<256x128xbf16, #tpu.memory_space<vmem>>, %arg6: memref<64x256xbf16, #tpu.memory_space<vmem>>, %arg7: memref<256x256xbf16, #tpu.memory_space<vmem>>, %arg8: memref<16x256xf32, #tpu.memory_space<vmem>>, %arg9: memref<8x256xf32, #tpu.memory_space<vmem>>, %arg10: memref<8x128xf32, #tpu.memory_space<vmem>>, %arg11: memref<8x256xbf16, #tpu.memory_space<vmem>>) attributes {dimension_semantics = [#tpu.dimension_semantics<arbitrary>], iteration_bounds = array<i64: 13>, scalar_prefetch = 0 : i64, scratch_operands = 1 : i64, tpu.core_type = #tpu.core_type<tc>, window_params = [{pipeline_mode = #tpu.pipeline_mode<synchronous>, transform_indices = @transform_0, window_bounds = array<i64: 8, 256>}, {pipeline_mode = #tpu.pipeline_mode<synchronous>, transform_indices = @transform_1, window_bounds = array<i64: 8, 64>}, {pipeline_mode = #tpu.pipeline_mode<synchronous>, transform_indices = @transform_2, window_bounds = array<i64: 256, 256>}, {transform_indices = @transform_3, window_bounds = array<i64: 1, 256, 256>}, {pipeline_mode = #tpu.pipeline_mode<synchronous>, transform_indices = @transform_4, window_bounds = array<i64: 256, 128>}, {pipeline_mode = #tpu.pipeline_mode<synchronous>, transform_indices = @transform_5, window_bounds = array<i64: 64, 256>}, {pipeline_mode = #tpu.pipeline_mode<synchronous>, transform_indices = @transform_6, window_bounds = array<i64: 256, 256>}, {pipeline_mode = #tpu.pipeline_mode<synchronous>, transform_indices = @transform_7, window_bounds = array<i64: 16, 256>}, {pipeline_mode = #tpu.pipeline_mode<synchronous>, transform_indices = @transform_8, window_bounds = array<i64: 8, 256>}, {pipeline_mode = #tpu.pipeline_mode<synchronous>, transform_indices = @transform_9, window_bounds = array<i64: 8, 128>}]} {
    %c0_i32 = arith.constant 0 : i32
    %0 = arith.cmpi eq, %arg0, %c0_i32 : i32
    %1 = arith.extui %0 : i1 to i32
    %c0_i32_0 = arith.constant 0 : i32
    %2 = arith.cmpi ne, %1, %c0_i32_0 : i32
    scf.if %2 {
      %c0 = arith.constant 0 : index
      %c0_5 = arith.constant 0 : index
      %16 = vector.load %arg1[%c0, %c0_5] : memref<8x256xbf16, #tpu.memory_space<vmem>>, vector<8x256xbf16>
      %c0_6 = arith.constant 0 : index
      %c0_7 = arith.constant 0 : index
      %17 = vector.load %arg3[%c0_6, %c0_7] : memref<256x256xbf16, #tpu.memory_space<vmem>>, vector<256x256xbf16>
      %cst = arith.constant dense<0.000000e+00> : vector<8x256xf32>
      %18 = tpu.matmul %16, %17, %cst {dimension_numbers = #tpu.dot_dimension_numbers<[1], [0], [0], [1], [0, 0, 1, 1], [], []>} : vector<8x256xbf16>, vector<256x256xbf16>, vector<8x256xf32> -> vector<8x256xf32>
      %c0_8 = arith.constant 0 : index
      %c0_9 = arith.constant 0 : index
      %19 = vector.load %arg8[%c0_8, %c0_9] : memref<16x256xf32, #tpu.memory_space<vmem>>, vector<1x256xf32>
      %20 = vector.broadcast %19 : vector<1x256xf32> to vector<8x256xf32>
      %21 = arith.addf %18, %20 : vector<8x256xf32>
      %cst_10 = arith.constant 0.000000e+00 : f32
      %22 = vector.broadcast %cst_10 : f32 to vector<8x256xf32>
      %23 = arith.maximumf %21, %22 : vector<8x256xf32>
      %24 = arith.truncf %23 : vector<8x256xf32> to vector<8x256xbf16>
      %c0_11 = arith.constant 0 : index
      %c0_12 = arith.constant 0 : index
      %25 = vector.load %arg11[%c0_11, %c0_12] : memref<8x256xbf16, #tpu.memory_space<vmem>>, vector<8x256xbf16>
      tpu.vector_store %arg11[%c0_11, %c0_12], %24 {strides = array<i32>} : memref<8x256xbf16, #tpu.memory_space<vmem>>, vector<8x256xbf16>,
    } else {
    }
    %c1_i32 = arith.constant 1 : i32
    %3 = arith.cmpi sge, %arg0, %c1_i32 : i32
    %c11_i32 = arith.constant 11 : i32
    %4 = arith.cmpi sle, %arg0, %c11_i32 : i32
    %5 = arith.andi %3, %4 : i1
    %c6_i32 = arith.constant 6 : i32
    %6 = arith.cmpi ne, %arg0, %c6_i32 : i32
    %7 = arith.andi %5, %6 : i1
    %8 = arith.extui %7 : i1 to i32
    %c0_i32_1 = arith.constant 0 : i32
    %9 = arith.cmpi ne, %8, %c0_i32_1 : i32
    scf.if %9 {
      %c5_i32 = arith.constant 5 : i32
      %16 = arith.cmpi sle, %arg0, %c5_i32 : i32
      %c1_i32_5 = arith.constant 1 : i32
      %17 = arith.addi %arg0, %c1_i32_5 : i32
      %18 = arith.select %16, %arg0, %17 : i32
      %c0 = arith.constant 0 : index
      %c0_6 = arith.constant 0 : index
      %19 = vector.load %arg11[%c0, %c0_6] : memref<8x256xbf16, #tpu.memory_space<vmem>>, vector<8x256xbf16>
      %c0_7 = arith.constant 0 : index
      %c0_8 = arith.constant 0 : index
      %c0_9 = arith.constant 0 : index
      %20 = vector.load %arg4[%c0_7, %c0_8, %c0_9] : memref<1x256x256xbf16, #tpu.memory_space<vmem>>, vector<1x256x256xbf16>
      %21 = vector.shape_cast %20 : vector<1x256x256xbf16> to vector<256x256xbf16>
      %cst = arith.constant dense<0.000000e+00> : vector<8x256xf32>
      %22 = tpu.matmul %19, %21, %cst {dimension_numbers = #tpu.dot_dimension_numbers<[1], [0], [0], [1], [0, 0, 1, 1], [], []>} : vector<8x256xbf16>, vector<256x256xbf16>, vector<8x256xf32> -> vector<8x256xf32>
      %23 = arith.index_cast %18 : i32 to index
      %c0_10 = arith.constant 0 : index
      %24 = vector.load %arg8[%23, %c0_10] : memref<16x256xf32, #tpu.memory_space<vmem>>, vector<1x256xf32>
      %25 = vector.broadcast %24 : vector<1x256xf32> to vector<8x256xf32>
      %26 = arith.addf %22, %25 : vector<8x256xf32>
      %cst_11 = arith.constant 0.000000e+00 : f32
      %27 = vector.broadcast %cst_11 : f32 to vector<8x256xf32>
      %28 = arith.maximumf %26, %27 : vector<8x256xf32>
      %29 = arith.truncf %28 : vector<8x256xf32> to vector<8x256xbf16>
      %c0_12 = arith.constant 0 : index
      %c0_13 = arith.constant 0 : index
      %30 = vector.load %arg11[%c0_12, %c0_13] : memref<8x256xbf16, #tpu.memory_space<vmem>>, vector<8x256xbf16>
      tpu.vector_store %arg11[%c0_12, %c0_13], %29 {strides = array<i32>} : memref<8x256xbf16, #tpu.memory_space<vmem>>, vector<8x256xbf16>,
    } else {
    }
    %c6_i32_2 = arith.constant 6 : i32
    %10 = arith.cmpi eq, %arg0, %c6_i32_2 : i32
    %11 = arith.extui %10 : i1 to i32
    %c0_i32_3 = arith.constant 0 : i32
    %12 = arith.cmpi ne, %11, %c0_i32_3 : i32
    scf.if %12 {
      %c0 = arith.constant 0 : index
      %c0_5 = arith.constant 0 : index
      %16 = vector.load %arg11[%c0, %c0_5] : memref<8x256xbf16, #tpu.memory_space<vmem>>, vector<8x256xbf16>
      %c0_6 = arith.constant 0 : index
      %c0_7 = arith.constant 0 : index
      %17 = vector.load %arg5[%c0_6, %c0_7] : memref<256x128xbf16, #tpu.memory_space<vmem>>, vector<256x128xbf16>
      %cst = arith.constant dense<0.000000e+00> : vector<8x128xf32>
      %18 = tpu.matmul %16, %17, %cst {dimension_numbers = #tpu.dot_dimension_numbers<[1], [0], [0], [1], [0, 0, 1, 1], [], []>} : vector<8x256xbf16>, vector<256x128xbf16>, vector<8x128xf32> -> vector<8x128xf32>
      %c6 = arith.constant 6 : index
      %c0_8 = arith.constant 0 : index
      %19 = vector.load %arg8[%c6, %c0_8] : memref<16x256xf32, #tpu.memory_space<vmem>>, vector<1x128xf32>
      %20 = vector.broadcast %19 : vector<1x128xf32> to vector<8x128xf32>
      %21 = arith.addf %18, %20 : vector<8x128xf32>
      %c0_9 = arith.constant 0 : index
      %c0_10 = arith.constant 0 : index
      %22 = vector.load %arg10[%c0_9, %c0_10] : memref<8x128xf32, #tpu.memory_space<vmem>>, vector<8x128xf32>
      tpu.vector_store %arg10[%c0_9, %c0_10], %21 {strides = array<i32>} : memref<8x128xf32, #tpu.memory_space<vmem>>, vector<8x128xf32>,
      %23 = vector.extract_strided_slice %21 {offsets = [0, 0], sizes = [8, 64], strides = [1, 1]} : vector<8x128xf32> to vector<8x64xf32>
      %24 = vector.extract_strided_slice %21 {offsets = [0, 64], sizes = [8, 64], strides = [1, 1]} : vector<8x128xf32> to vector<8x64xf32>
      %cst_11 = arith.constant 5.000000e-01 : f32
      %25 = vector.broadcast %cst_11 : f32 to vector<8x64xf32>
      %26 = arith.mulf %25, %24 : vector<8x64xf32>
      %27 = math.exp %26 : vector<8x64xf32>
      %c0_12 = arith.constant 0 : index
      %c0_13 = arith.constant 0 : index
      %28 = vector.load %arg2[%c0_12, %c0_13] : memref<8x64xf32, #tpu.memory_space<vmem>>, vector<8x64xf32>
      %29 = arith.mulf %27, %28 : vector<8x64xf32>
      %30 = arith.addf %23, %29 : vector<8x64xf32>
      %31 = arith.truncf %30 : vector<8x64xf32> to vector<8x64xbf16>
      %c0_14 = arith.constant 0 : index
      %c0_15 = arith.constant 0 : index
      %32 = vector.load %arg6[%c0_14, %c0_15] : memref<64x256xbf16, #tpu.memory_space<vmem>>, vector<64x256xbf16>
      %cst_16 = arith.constant dense<0.000000e+00> : vector<8x256xf32>
      %33 = tpu.matmul %31, %32, %cst_16 {dimension_numbers = #tpu.dot_dimension_numbers<[1], [0], [0], [1], [0, 0, 1, 1], [], []>} : vector<8x64xbf16>, vector<64x256xbf16>, vector<8x256xf32> -> vector<8x256xf32>
      %c7 = arith.constant 7 : index
      %c0_17 = arith.constant 0 : index
      %34 = vector.load %arg8[%c7, %c0_17] : memref<16x256xf32, #tpu.memory_space<vmem>>, vector<1x256xf32>
      %35 = vector.broadcast %34 : vector<1x256xf32> to vector<8x256xf32>
      %36 = arith.addf %33, %35 : vector<8x256xf32>
      %37 = arith.truncf %36 : vector<8x256xf32> to vector<8x256xbf16>
      %c0_18 = arith.constant 0 : index
      %c0_19 = arith.constant 0 : index
      %38 = vector.load %arg11[%c0_18, %c0_19] : memref<8x256xbf16, #tpu.memory_space<vmem>>, vector<8x256xbf16>
      tpu.vector_store %arg11[%c0_18, %c0_19], %37 {strides = array<i32>} : memref<8x256xbf16, #tpu.memory_space<vmem>>, vector<8x256xbf16>,
    } else {
    }
    %c12_i32 = arith.constant 12 : i32
    %13 = arith.cmpi eq, %arg0, %c12_i32 : i32
    %14 = arith.extui %13 : i1 to i32
    %c0_i32_4 = arith.constant 0 : i32
    %15 = arith.cmpi ne, %14, %c0_i32_4 : i32
    scf.if %15 {
      %c0 = arith.constant 0 : index
      %c0_5 = arith.constant 0 : index
      %16 = vector.load %arg11[%c0, %c0_5] : memref<8x256xbf16, #tpu.memory_space<vmem>>, vector<8x256xbf16>
      %c0_6 = arith.constant 0 : index
      %c0_7 = arith.constant 0 : index
      %17 = vector.load %arg7[%c0_6, %c0_7] : memref<256x256xbf16, #tpu.memory_space<vmem>>, vector<256x256xbf16>
      %cst = arith.constant dense<0.000000e+00> : vector<8x256xf32>
      %18 = tpu.matmul %16, %17, %cst {dimension_numbers = #tpu.dot_dimension_numbers<[1], [0], [0], [1], [0, 0, 1, 1], [], []>} : vector<8x256xbf16>, vector<256x256xbf16>, vector<8x256xf32> -> vector<8x256xf32>
      %c13 = arith.constant 13 : index
      %c0_8 = arith.constant 0 : index
      %19 = vector.load %arg8[%c13, %c0_8] : memref<16x256xf32, #tpu.memory_space<vmem>>, vector<1x256xf32>
      %20 = vector.broadcast %19 : vector<1x256xf32> to vector<8x256xf32>
      %21 = arith.addf %18, %20 : vector<8x256xf32>
      %22 = arith.negf %21 : vector<8x256xf32>
      %23 = math.exp %22 : vector<8x256xf32>
      %cst_9 = arith.constant 1.000000e+00 : f32
      %24 = vector.broadcast %cst_9 : f32 to vector<8x256xf32>
      %25 = arith.addf %24, %23 : vector<8x256xf32>
      %26 = arith.divf %24, %25 : vector<8x256xf32>
      %c0_10 = arith.constant 0 : index
      %c0_11 = arith.constant 0 : index
      %27 = vector.load %arg9[%c0_10, %c0_11] : memref<8x256xf32, #tpu.memory_space<vmem>>, vector<8x256xf32>
      tpu.vector_store %arg9[%c0_10, %c0_11], %26 {strides = array<i32>} : memref<8x256xf32, #tpu.memory_space<vmem>>, vector<8x256xf32>,
    } else {
    }
    return
  }
  func.func @transform_0(%arg0: i32) -> (i32, i32) {
    %c0_i32 = arith.constant 0 : i32
    %c0_i32_0 = arith.constant 0 : i32
    %c0_i32_1 = arith.constant 0 : i32
    return %c0_i32, %c0_i32_0 : i32, i32
  }
  func.func @transform_1(%arg0: i32) -> (i32, i32) {
    %c0_i32 = arith.constant 0 : i32
    %c0_i32_0 = arith.constant 0 : i32
    %c0_i32_1 = arith.constant 0 : i32
    return %c0_i32, %c0_i32_0 : i32, i32
  }
  func.func @transform_2(%arg0: i32) -> (i32, i32) {
    %c0_i32 = arith.constant 0 : i32
    %c0_i32_0 = arith.constant 0 : i32
    %c0_i32_1 = arith.constant 0 : i32
    return %c0_i32, %c0_i32_0 : i32, i32
  }
  func.func @transform_3(%arg0: i32) -> (i32, i32, i32) {
    %c6_i32 = arith.constant 6 : i32
    %0 = arith.cmpi sle, %arg0, %c6_i32 : i32
    %c1_i32 = arith.constant 1 : i32
    %1 = arith.subi %arg0, %c1_i32 : i32
    %c2_i32 = arith.constant 2 : i32
    %2 = arith.subi %arg0, %c2_i32 : i32
    %3 = arith.select %0, %1, %2 : i32
    %c9_i32 = arith.constant 9 : i32
    %4 = arith.minsi %3, %c9_i32 : i32
    %c0_i32 = arith.constant 0 : i32
    %5 = arith.maxsi %4, %c0_i32 : i32
    %c0_i32_0 = arith.constant 0 : i32
    %c0_i32_1 = arith.constant 0 : i32
    %c0_i32_2 = arith.constant 0 : i32
    return %5, %c0_i32_0, %c0_i32_1 : i32, i32, i32
  }
  func.func @transform_4(%arg0: i32) -> (i32, i32) {
    %c0_i32 = arith.constant 0 : i32
    %c0_i32_0 = arith.constant 0 : i32
    %c0_i32_1 = arith.constant 0 : i32
    return %c0_i32, %c0_i32_0 : i32, i32
  }
  func.func @transform_5(%arg0: i32) -> (i32, i32) {
    %c0_i32 = arith.constant 0 : i32
    %c0_i32_0 = arith.constant 0 : i32
    %c0_i32_1 = arith.constant 0 : i32
    return %c0_i32, %c0_i32_0 : i32, i32
  }
  func.func @transform_6(%arg0: i32) -> (i32, i32) {
    %c0_i32 = arith.constant 0 : i32
    %c0_i32_0 = arith.constant 0 : i32
    %c0_i32_1 = arith.constant 0 : i32
    return %c0_i32, %c0_i32_0 : i32, i32
  }
  func.func @transform_7(%arg0: i32) -> (i32, i32) {
    %c0_i32 = arith.constant 0 : i32
    %c0_i32_0 = arith.constant 0 : i32
    %c0_i32_1 = arith.constant 0 : i32
    return %c0_i32, %c0_i32_0 : i32, i32
  }
  func.func @transform_8(%arg0: i32) -> (i32, i32) {
    %c0_i32 = arith.constant 0 : i32
    %c0_i32_0 = arith.constant 0 : i32
    %c0_i32_1 = arith.constant 0 : i32
    return %c0_i32, %c0_i32_0 : i32, i32
  }
  func.func @transform_9(%arg0: i32) -> (i32, i32) {
    %c0_i32 = arith.constant 0 : i32
    %c0_i32_0 = arith.constant 0 : i32
    %c0_i32_1 = arith.constant 0 : i32
    return %c0_i32, %c0_i32_0 : i32, i32
  }
}

</mosaic_0001>

<bundles_post_ra>
// kernel: vae_forward_fused.1
= control target key start
LH: loop header
LB: loop body
LE: loop exit
PB: predicated region body
PF: predicated region fallthrough
CT: control target
= control target key end

     0   :  { %s2774_s0 = inlined_call_operand.vmem [shape: bf16[8,256], index: 0, kind: input, shape index: {}]   ;;  %s2775_s1 = inlined_call_operand.vmem [shape: f32[8,64], index: 1, kind: input, shape index: {}]   ;;  %s2776_s2 = inlined_call_operand.hbm [shape: bf16[256,256], index: 2, kind: input, shape index: {}]   ;;  %s2777_s3 = inlined_call_operand.hbm [shape: bf16[10,256,256], index: 3, kind: input, shape index: {}]   ;;  %s2778_s4 = inlined_call_operand.hbm [shape: bf16[256,128], index: 4, kind: input, shape index: {}]   ;;  %s2779_s5 = inlined_call_operand.hbm [shape: bf16[64,256], index: 5, kind: input, shape index: {}]   ;;  %s2780_s6 = inlined_call_operand.hbm [shape: bf16[256,256], index: 6, kind: input, shape index: {}]   ;;  %s2781_s7 = inlined_call_operand.hbm [shape: f32[16,256], index: 7, kind: input, shape index: {}]   ;;  %s2782_s8 = inlined_call_operand.vmem [shape: f32[8,256], index: 8, kind: output, shape index: {0}]   ;;  %s2783_s9 = inlined_call_operand.vmem [shape: f32[8,128], index: 9, kind: output, shape index: {1}]  }
   0x1   :  { %2788 = sst [smem:[#allocation18_spill]] %s2782_s8 }
   0x2   :  { %2789 = sst [smem:[#allocation19_spill]] %s2783_s9 }
   0x3   :  { %15 = vsyncpa [#allocation4], 0 }
   0x4   :  { %16 = vsyncpa [#allocation6], 0 }
   0x5   :  { %18 = vsyncpa [#allocation6 + $0x1], 0 }
   0x6   :  { %19 = vsyncpa [#allocation9], 0 }
   0x7   :  { %20 = vsyncpa [#allocation12], 0  ;;  %s2463_s30 = smov 0   ;;  %s2465_s10 = smov 0  }
   0x8   :  { %s2467_s11 = smov 0   ;;  %s2469_s12 = smov 0  }
   0x9 LB: > { %s2482_s13 = sadd.s32 4294967295, %s2397_s12   ;;  %p125_p0 = scmp.ne.s32.totalorder %s2389_s10, %s2385_s30  ;;  %s2397_s12 = sphi %s2469_s12, %s2811_s12   ;;  %s2393_s11 = sphi %s2467_s11, %s2810_s11   ;;  %s2389_s10 = sphi %s2465_s10, %s2809_s10   ;;  %s2385_s30 = sphi %s2463_s30, %s2808_s30  }
   0xa   : > { %p2784_p1 = scmp.eq.s32.totalorder %s2482_s13, 0  ;;  %p1691_p2 = scmp.ge.s32.totalorder %s2397_s12, 1 }
   0xb   : > { %p262_p3 = scmp.lt.s32.totalorder %s2397_s12, 14  ;;  %s2399_s16 = smov [#allocation7]  }
   0xc   : > { %p2491_p5 = por %p2784_p1, %p125_p0  ;;  %s293_s17 = sshll.u32 %s2399_s16, 4  ;;  %s294_s17 = int_to_ptr.vmem [resolvable:$true] %s293_s17 }
   0xd   : > { %p2495_p6 = pnand %p1691_p2, %p262_p3  ;;  %s2400_s19 = smov [#allocation8]  }
   0xe   : > { %s2790_s14 = scalar_select %p2491_p5, 1, 0 }
   0xf   : > { %s2791_s15 = scalar_select %p2495_p6, 1, 0 }
  0x10   : > { %p1911_p7 = pneg %p2495_p6  ;;  %s306_s20 = sshll.u32 %s2400_s19, 4  ;;  %s307_s20 = int_to_ptr.vmem [resolvable:$true] %s306_s20 }
  0x11   : > { %s2177_s23 = scalar_lea.hbm %s2778_s4, 2048 }
  0x12   : > { %p2503_p8 = pnand %p1911_p7, %p2784_p1  ;;  %p2178_p9 = scmp.ne.s32.totalorder %s2778_s4, %s2177_s23 }
  0x13   : > { %p2184_p13 = scmp.lt.u32.totalorder %s2177_s23, %s2778_s4 }
  0x14   : > { %p2515_p10 = pneg %p2503_p8 }
  0x16   : > { %p2180_p11 = pnand %p2515_p10, %p2178_p9 }
  0x18   : > { %p2181_p12 = pneg %p2180_p11 }
  0x1a   : > { %p2186_p0 = pnand %p2184_p13, %p2181_p12 }
  0x1c   : > { %2189 = shalt.err (!%p2186_p0)
}
  0x1d   : > { %s2190_s29 = scalar_lea.vmem %s294_s17, 2048  ;;  %p2198_p4 = scmp.lt.s32.totalorder %s294_s17, %s294_s17 }
  0x1e   : > { %p2191_p2 = scmp.ne.s32.totalorder %s294_s17, %s2190_s29  ;;  %p2199_p1 = scmp.lt.s32.totalorder %s2190_s29, %s2190_s29 }
  0x20   : > { %p2193_p3 = pnand %p2191_p2, %p2515_p10  ;;  %p2200_p5 = por %p2199_p1, %p2198_p4 }
  0x22   : > { %p2194_p7 = pneg %p2193_p3 }
  0x24   : > { %p2201_p6 = pnand %p2200_p5, %p2194_p7 }
  0x26   : > { %2204 = shalt.err (!%p2201_p6)
}
  0x27   : > { %s2401_s30 = smov 64   ;;  %s2402_s16 = smov 4  }
  0x28   : > { %1917 = dma.hbm_to_vmem [thread:$0]  (!%p2503_p8), %s2778_s4, 2048, %s294_s17, [#allocation6], %s2401_s30, %s2401_s30, %s2402_s16  }
  0x29   : > { %s2403_s22 = smov [#allocation3]   ;;  %s2205_s27 = scalar_lea.hbm %s2779_s5, 1024 }
  0x2a   : > { %s280_s23 = sshll.u32 %s2403_s22, 4  ;;  %p2206_p1 = scmp.ne.s32.totalorder %s2779_s5, %s2205_s27  ;;  %s281_s23 = int_to_ptr.vmem [resolvable:$true] %s280_s23 }
  0x2b   : > { %p2212_p6 = scmp.lt.u32.totalorder %s2205_s27, %s2779_s5 }
  0x2c   : > { %p2208_p4 = pnand %p2206_p1, %p2515_p10 }
  0x2e   : > { %p2209_p5 = pneg %p2208_p4 }
  0x30   : > { %p2214_p9 = pnand %p2212_p6, %p2209_p5 }
  0x32   : > { %2217 = shalt.err (!%p2214_p9)
}
  0x33   : > { %s2218_s17 = scalar_lea.vmem %s307_s20, 1024  ;;  %p2226_p0 = scmp.lt.s32.totalorder %s307_s20, %s307_s20 }
  0x34   : > { %p2219_p11 = scmp.ne.s32.totalorder %s307_s20, %s2218_s17  ;;  %p2227_p2 = scmp.lt.s32.totalorder %s2218_s17, %s2218_s17 }
  0x36   : > { %p2221_p12 = pnand %p2219_p11, %p2515_p10  ;;  %p2228_p3 = por %p2227_p2, %p2226_p0 }
  0x38   : > { %p2222_p13 = pneg %p2221_p12 }
  0x3a   : > { %p2229_p7 = pnand %p2228_p3, %p2222_p13 }
  0x3c   : > { %2232 = shalt.err (!%p2229_p7)
}
  0x3d   : > { %s2404_s30 = smov 128   ;;  %s2405_s16 = smov 8  }
  0x3e   : > { %1920 = dma.hbm_to_vmem [thread:$0]  (!%p2503_p8), %s2779_s5, 1024, %s307_s20, [#allocation9], %s2404_s30, %s2404_s30, %s2405_s16  }
  0x3f   : > { %s2233_s22 = scalar_lea.hbm %s2776_s2, 4096 }
  0x40   : > { %p2234_p1 = scmp.ne.s32.totalorder %s2776_s2, %s2233_s22  ;;  %p2240_p6 = scmp.lt.u32.totalorder %s2233_s22, %s2776_s2 }
  0x42   : > { %p2236_p4 = pnand %p2234_p1, %p2515_p10 }
  0x44   : > { %p2237_p5 = pneg %p2236_p4 }
  0x46   : > { %p2242_p9 = pnand %p2240_p6, %p2237_p5 }
  0x48   : > { %2245 = shalt.err (!%p2242_p9)
}
  0x49   : > { %s2246_s29 = scalar_lea.vmem %s281_s23, 4096  ;;  %p2254_p0 = scmp.lt.s32.totalorder %s281_s23, %s281_s23 }
  0x4a   : > { %p2247_p11 = scmp.ne.s32.totalorder %s281_s23, %s2246_s29  ;;  %p2255_p2 = scmp.lt.s32.totalorder %s2246_s29, %s2246_s29 }
  0x4c   : > { %p2249_p12 = pnand %p2247_p11, %p2515_p10  ;;  %p2256_p3 = por %p2255_p2, %p2254_p0 }
  0x4e   : > { %p2250_p13 = pneg %p2249_p12 }
  0x50   : > { %p2257_p7 = pnand %p2256_p3, %p2250_p13 }
  0x52   : > { %2260 = shalt.err (!%p2257_p7)
}
  0x53   : > { %1914 = dma.hbm_to_vmem [thread:$0]  (!%p2503_p8), %s2776_s2, 4096, %s281_s23, [#allocation4], %s2404_s30, %s2404_s30, %s2405_s16  }
  0x54   : > { %s2406_s8 = smov [#allocation10]   ;;  %s2407_s19 = smov [#allocation11]  }
  0x55   : > { %s319_s9 = sshll.u32 %s2406_s8, 4  ;;  %s332_s21 = sshll.u32 %s2407_s19, 4  ;;  %s320_s9 = int_to_ptr.vmem [resolvable:$true] %s319_s9  ;;  %s333_s21 = int_to_ptr.vmem [resolvable:$true] %s332_s21 }
  0x56   : > { %s2261_s25 = scalar_lea.hbm %s2780_s6, 4096 }
  0x57   : > { %p2262_p1 = scmp.ne.s32.totalorder %s2780_s6, %s2261_s25  ;;  %p2268_p6 = scmp.lt.u32.totalorder %s2261_s25, %s2780_s6 }
  0x59   : > { %p2264_p4 = pnand %p2262_p1, %p2515_p10 }
  0x5b   : > { %p2265_p5 = pneg %p2264_p4 }
  0x5d   : > { %p2270_p9 = pnand %p2268_p6, %p2265_p5 }
  0x5f   : > { %2273 = shalt.err (!%p2270_p9)
}
  0x60   : > { %s2274_s23 = scalar_lea.vmem %s320_s9, 4096  ;;  %p2282_p0 = scmp.lt.s32.totalorder %s320_s9, %s320_s9 }
  0x61   : > { %p2275_p11 = scmp.ne.s32.totalorder %s320_s9, %s2274_s23  ;;  %p2283_p2 = scmp.lt.s32.totalorder %s2274_s23, %s2274_s23 }
  0x63   : > { %p2277_p12 = pnand %p2275_p11, %p2515_p10  ;;  %p2284_p3 = por %p2283_p2, %p2282_p0 }
  0x65   : > { %p2278_p13 = pneg %p2277_p12 }
  0x67   : > { %p2285_p7 = pnand %p2284_p3, %p2278_p13 }
  0x69   : > { %2288 = shalt.err (!%p2285_p7)
}
  0x6a   : > { %1923 = dma.hbm_to_vmem [thread:$0]  (!%p2503_p8), %s2780_s6, 4096, %s320_s9, [#allocation9], %s2404_s30, %s2404_s30, %s2405_s16  }
  0x6b   : > { %s2289_s24 = scalar_lea.hbm %s2781_s7, 512 }
  0x6c   : > { %p2290_p1 = scmp.ne.s32.totalorder %s2781_s7, %s2289_s24  ;;  %p2296_p6 = scmp.lt.u32.totalorder %s2289_s24, %s2781_s7 }
  0x6e   : > { %p2292_p4 = pnand %p2290_p1, %p2515_p10 }
  0x70   : > { %p2293_p5 = pneg %p2292_p4 }
  0x72   : > { %p2298_p9 = pnand %p2296_p6, %p2293_p5 }
  0x74   : > { %2301 = shalt.err (!%p2298_p9)
}
  0x75   : > { %s2302_s20 = scalar_lea.vmem %s333_s21, 512  ;;  %p2310_p0 = scmp.lt.s32.totalorder %s333_s21, %s333_s21 }
  0x76   : > { %p2303_p11 = scmp.ne.s32.totalorder %s333_s21, %s2302_s20  ;;  %p2311_p2 = scmp.lt.s32.totalorder %s2302_s20, %s2302_s20 }
  0x78   : > { %p2305_p12 = pnand %p2303_p11, %p2515_p10  ;;  %p2312_p3 = por %p2311_p2, %p2310_p0 }
  0x7a   : > { %p2306_p13 = pneg %p2305_p12 }
  0x7c   : > { %p2313_p7 = pnand %p2312_p3, %p2306_p13 }
  0x7e   : > { %2316 = shalt.err (!%p2313_p7)
}
  0x7f   : > { %s2408_s9 = smov 256   ;;  %s2409_s23 = smov 16  }
  0x80   : > { %1926 = dma.hbm_to_vmem [thread:$0]  (!%p2503_p8), %s2781_s7, 512, %s333_s21, [#allocation12], %s2408_s9, %s2408_s9, %s2409_s23  }
  0x81   : > { %s2613_s26 = sadd.s32 1, %s2397_s12   ;;  %p93_p10 = scmp.le.s32.totalorder %s2397_s12, 6 }
  0x82   : > { %s1678_s19 = sadd.s32 4294967294, %s2397_s12  ;;  %p101_p1 = scmp.le.s32.totalorder %s2613_s26, 6 }
  0x83   : > { %s1684_s22 = sadd.s32 4294967295, %s2613_s26  ;;  %s1685_s25 = sadd.s32 4294967294, %s2613_s26 }
  0x84   : > { %s96_s24 = scalar_select %p93_p10, %s2482_s13, %s1678_s19 }
  0x85   : > { %s112_s18 = sadd.s32 1, %s2393_s11  ;;  %s2813_s22 = smov (!%p101_p1, %s1684_s22), %s1685_s25 }
  0x86   : > { %p97_p4 = scmp.lt.s32.totalorder %s96_s24, 9  ;;  %p1679_p8 = scmp.gt.s32.totalorder %s96_s24, 0 }
  0x87   : > { %p105_p5 = scmp.lt.s32.totalorder %s2813_s22, 9  ;;  %p1686_p6 = scmp.gt.s32.totalorder %s2813_s22, 0 }
  0x88   : > { %s2815_s24 = smov (!%p97_p4, %s96_s24), 9  ;;  %p119_p9 = scmp.ne.s32.totalorder %s2393_s11, %s2389_s10 }
  0x89   : > { %s2817_s24 = smov (!%p1679_p8, %s2815_s24), 0  ;;  %s2819_s22 = smov (!%p105_p5, %s2813_s22), 9 }
  0x8a   : > { %p120_p11 = scmp.eq.s32.totalorder %s2397_s12, 0  ;;  %s2821_s22 = smov (!%p1686_p6, %s2819_s22), 0 }
  0x8b   : > { %p1936_p13 = scmp.lt.s32.totalorder %s2397_s12, 13  ;;  %s109_s21 = ssub.s32 %s2817_s24, %s2821_s22 }
  0x8c   : > { %p121_p12 = por %p120_p11, %p119_p9  ;;  %s346_s27 = sand.u32 1, %s2397_s12  }
  0x8d   : > { %p110_p0 = scmp.eq.s32.totalorder %s109_s21, 0  ;;  %s348_s28 = sand.u32 1, %s2393_s11  }
  0x8e   : > { %s1862_s29 = sshll.u32 %s2817_s24, 12  ;;  %s1698_s9 = sshll.u32 %s348_s28, 8 }
  0x8f   : > { %s2629_s20 = scalar_select %p110_p0, %s2393_s11, %s112_s18  }
  0x90   : > { %s2634_s8 = scalar_lea.hbm %s2777_s3, %s1862_s29  ;;  %p2636_p2 = pnand %p1936_p13, %p121_p12 }
  0x91   : > { %s350_s12 = scalar_lea.vmem [#allocation5], %s1698_s9  ;;  %s2642_s24 = scalar_lea.sflag [#allocation6], %s346_s27 }
  0x92   : > { %s365_s22 = sshll.u32 %s350_s12, 4  ;;  %s2317_s25 = scalar_lea.hbm %s2634_s8, 4096  ;;  %s2640_s22 = int_to_ptr.vmem [resolvable:$true] %s365_s22 }
  0x93   : > { %p2318_p3 = scmp.ne.s32.totalorder %s2634_s8, %s2317_s25  ;;  %p2319_p7 = pneg %p2636_p2 }
  0x94   : > { %s2322_s28 = scalar_lea.hbm %s2777_s3, 40960  ;;  %p2323_p4 = scmp.lt.u32.totalorder %s2634_s8, %s2777_s3 }
  0x95   : > { %p2320_p10 = pnand %p2319_p7, %p2318_p3  ;;  %p2324_p8 = scmp.lt.u32.totalorder %s2322_s28, %s2317_s25 }
  0x96   : > { %p2326_p6 = scmp.lt.u32.totalorder %s2317_s25, %s2634_s8 }
  0x97   : > { %p2321_p1 = pneg %p2320_p10  ;;  %p2325_p5 = por %p2324_p8, %p2323_p4 }
  0x99   : > { %p2327_p9 = por %p2326_p6, %p2325_p5 }
  0x9b   : > { %p2328_p11 = pnand %p2327_p9, %p2321_p1 }
  0x9d   : > { %2331 = shalt.err (!%p2328_p11)
}
  0x9e   : > { %s2332_s27 = scalar_lea.vmem %s2640_s22, 4096  ;;  %s2410_s9 = smov [#allocation5]  }
  0x9f   : > { %p2333_p12 = scmp.ne.s32.totalorder %s2640_s22, %s2332_s27  ;;  %s2337_s17 = sshll.u32 %s2410_s9, 4  ;;  %s2338_s17 = int_to_ptr.vmem [resolvable:$false] %s2337_s17 }
  0xa0   : > { %s2339_s12 = scalar_lea.vmem %s2338_s17, 8192  ;;  %p2340_p3 = scmp.lt.s32.totalorder %s2640_s22, %s2338_s17 }
  0xa1   : > { %p2335_p13 = pnand %p2333_p12, %p2319_p7  ;;  %p2341_p10 = scmp.lt.s32.totalorder %s2339_s12, %s2332_s27 }
  0xa3   : > { %p2336_p0 = pneg %p2335_p13  ;;  %p2342_p4 = por %p2341_p10, %p2340_p3 }
  0xa5   : > { %p2343_p8 = pnand %p2342_p4, %p2336_p0 }
  0xa7   : > { %2346 = shalt.err (!%p2343_p8)
}
  0xa8   : > { %1930 = dma.hbm_to_vmem [thread:$0]  (!%p2636_p2), %s2634_s8, 4096, %s2640_s22, %s2642_s24, %s2404_s30, %s2404_s30, %s2405_s16  }
  0xa9   : > { %p2795_p7 = scmp.ne.s32.totalorder %s2791_s15, 0 }
  0xaa   : > { %p2796_p1 = scmp.eq.s32.totalorder (!%p2795_p7), %s2482_s13, 0 }
  0xab   : > { %377 = sbr.rel (%p2795_p7) target bundleno = 1683 (0x693), region = 52 }
  0xb2   : > { %2364 = dma.done.wait (%p2796_p1), [#allocation4], 4096   ;;  %p2797_p5 = pmov %p2796_p1 }
  0xb3   : > { %s383_s19 = sand.u32 1, %s2482_s13   ;;  %s385_s25 = sand.u32 1, %s2389_s10  }
  0xb4   : > { %2366 = vsyncadd (%p2797_p5), [#allocation4], 4294963200  ;;  %s1710_s18 = sshll.u32 %s385_s25, 8  ;;  %s384_s21 = scalar_lea.sflag [#allocation6], %s383_s19 }
  0xb5   : > { %s2681_s28 = scalar_lea.vmem [#allocation5], %s1710_s18  ;;  %p2798_p6 = scmp.ne.s32.totalorder %s2790_s14, 0 }
  0xb7   : > { %2368 = dma.done.wait (%p2798_p6), %s384_s21, 4096  }
  0xb8   : > { %2370 = vsyncadd (%p2798_p6), %s384_s21, 4294963200  ;;  %p2799_p2 = pmov %p2796_p1 }
  0xb9   : > { %p2800_p9 = pmov %p2796_p1 }
  0xba   : > { %2372 = dma.done.wait (%p2799_p2), [#allocation6], 2048  }
  0xbb   : > { %2374 = vsyncadd (%p2800_p9), [#allocation6], 4294965248  ;;  %p2801_p11 = pmov %p2796_p1 }
  0xbc   : > { %p2802_p12 = pmov %p2796_p1 }
  0xbd   : > { %2376 = dma.done.wait (%p2801_p11), [#allocation9], 5120  }
  0xbe   : > { %2378 = vsyncadd (%p2802_p12), [#allocation9], 4294962176  ;;  %p2803_p13 = pmov %p2796_p1 }
  0xbf   : > { %p2804_p0 = pmov %p2796_p1 }
  0xc0   : > { %2380 = dma.done.wait (%p2803_p13), [#allocation12], 512  }
  0xc1   : > { %2382 = vsyncadd (%p2804_p0), [#allocation12], 4294966784  ;;  %p2805_p3 = scmp.ne.s32.totalorder %s2482_s13, 0 }
  0xc2   : > { %v1987_v0 = vld [vmem:[#allocation3 + $0x4] ss:$8 sps:$4 sm:$0xff] (!%p2805_p3)   ;;  %v1989_v1 = vld [vmem:[#allocation3] ss:$8 sps:$4 sm:$0xff] (!%p2805_p3)   ;;  %v1990_v2 = vld [vmem:[#allocation3 + $0x14] ss:$8 sps:$4 sm:$0xff] (!%p2805_p3)   ;;  %v481_v35 = vlaneseq (!%p2805_p3) }
  0xc3   : > { %445 = sbr.rel (%p2805_p3) target bundleno = 479 (0x1df), region = 80  ;;  %658 = vmatprep.subr.bf16.mxu0 (!%p2805_p3), %v1987_v0  ;;  %v1992_v3 = vld [vmem:[#allocation3 + $0x10] ss:$8 sps:$4 sm:$0xff] (!%p2805_p3)   ;;  %v1993_v4 = vld [vmem:[#allocation3 + $0x24] ss:$8 sps:$4 sm:$0xff] (!%p2805_p3)  }
  0xc4   : > { %659 = vmatpush1.bf16.msra.mxu0 (!%p2805_p3), %v1989_v1  ;;  %v1995_v5 = vld [vmem:[#allocation3 + $0x20] ss:$8 sps:$4 sm:$0xff] (!%p2805_p3)   ;;  %v1996_v6 = vld [vmem:[#allocation3 + $0x34] ss:$8 sps:$4 sm:$0xff] (!%p2805_p3)   ;;  %v1998_v7 = vld [vmem:[#allocation3 + $0x30] ss:$8 sps:$4 sm:$0xff] (!%p2805_p3)  }
  0xc5   : > { %660 = vmatprep.subr.bf16.mxu0 (!%p2805_p3), %v1990_v2  ;;  %v1999_v8 = vld [vmem:[#allocation3 + $0x44] ss:$8 sps:$4 sm:$0xff] (!%p2805_p3)   ;;  %v2001_v9 = vld [vmem:[#allocation3 + $0x40] ss:$8 sps:$4 sm:$0xff] (!%p2805_p3)   ;;  %v2002_v10 = vld [vmem:[#allocation3 + $0x54] ss:$8 sps:$4 sm:$0xff] (!%p2805_p3)  }
  0xc6   : > { %v2004_v11 = vld [vmem:[#allocation3 + $0x50] ss:$8 sps:$4 sm:$0xff] (!%p2805_p3)   ;;  %v2005_v12 = vld [vmem:[#allocation3 + $0x64] ss:$8 sps:$4 sm:$0xff] (!%p2805_p3)   ;;  %v2007_v15 = vld [vmem:[#allocation3 + $0x60] ss:$8 sps:$4 sm:$0xff] (!%p2805_p3)  }
  0xc7   : > { %v446_v13 = vld [vmem:[%s2774_s0] sm:$0xff] (!%p2805_p3)  ;;  %v2011_v18 = vld [vmem:[#allocation3 + $0x84] ss:$8 sps:$4 sm:$0xff] (!%p2805_p3)   ;;  %v2013_v19 = vld [vmem:[#allocation3 + $0x80] ss:$8 sps:$4 sm:$0xff] (!%p2805_p3)   ;;  %v482_v36 = vshrl.u32 (!%p2805_p3), %v481_v35, 7 }
  0xc8   : > { %661 = vmatpush1.bf16.msra.mxu0 (!%p2805_p3), %v1992_v3  ;;  %v1717_v14 = vcombine.high (!%p2805_p3), %v446_v13, %v446_v13  ;;  %v2008_v16 = vld [vmem:[#allocation3 + $0x74] ss:$8 sps:$4 sm:$0xff] (!%p2805_p3)   ;;  %v2010_v17 = vld [vmem:[#allocation3 + $0x70] ss:$8 sps:$4 sm:$0xff] (!%p2805_p3)   ;;  %v2017_v22 = vld [vmem:[#allocation3 + $0xa4] ss:$8 sps:$4 sm:$0xff] (!%p2805_p3)   ;;  %v1716_v34 = vcombine.low (!%p2805_p3), %v446_v13, %v446_v13 }
  0xc9   : > { %662 = vmatprep.subr.bf16.mxu0 (!%p2805_p3), %v1993_v4  ;;  %v2014_v20 = vld [vmem:[#allocation3 + $0x94] ss:$8 sps:$4 sm:$0xff] (!%p2805_p3)   ;;  %v2016_v21 = vld [vmem:[#allocation3 + $0x90] ss:$8 sps:$4 sm:$0xff] (!%p2805_p3)   ;;  %v2019_v23 = vld [vmem:[#allocation3 + $0xa0] ss:$8 sps:$4 sm:$0xff] (!%p2805_p3)  }
  0xca   : > { %690 = vmatprep.mubr.bf16.mxu0 %v1717_v14  ;;  %v2020_v24 = vld [vmem:[#allocation3 + $0xb4] ss:$8 sps:$4 sm:$0xff]   ;;  %v2022_v25 = vld [vmem:[#allocation3 + $0xb0] ss:$8 sps:$4 sm:$0xff]   ;;  %v2023_v26 = vld [vmem:[#allocation3 + $0xc4] ss:$8 sps:$4 sm:$0xff]  }
  0xcb   : > { %v2025_v27 = vld [vmem:[#allocation3 + $0xc0] ss:$8 sps:$4 sm:$0xff]   ;;  %v2026_v28 = vld [vmem:[#allocation3 + $0xd4] ss:$8 sps:$4 sm:$0xff]   ;;  %v2028_v29 = vld [vmem:[#allocation3 + $0xd0] ss:$8 sps:$4 sm:$0xff]  }
  0xcc   : > { %663 = vmatpush1.bf16.msra.mxu0 %v1995_v5  ;;  %v2029_v30 = vld [vmem:[#allocation3 + $0xe4] ss:$8 sps:$4 sm:$0xff]   ;;  %v2031_v31 = vld [vmem:[#allocation3 + $0xe0] ss:$8 sps:$4 sm:$0xff]   ;;  %v2032_v32 = vld [vmem:[#allocation3 + $0xf4] ss:$8 sps:$4 sm:$0xff]  }
  0xcd   : > { %664 = vmatprep.subr.bf16.mxu0 %v1996_v6  ;;  %v2034_v33 = vld [vmem:[#allocation3 + $0xf0] ss:$8 sps:$4 sm:$0xff]   ;;  %v483_v37 = vsub.s32 0, %v482_v36  ;;  %v479_v38 = vld [vmem:[#allocation11] ss:$8 sm:$0x3] }
  0xce   : > { %v487_v39 = vsub.s32 1, %v482_v36 }
  0xcf   : > { %v484_v40 = vrot.slane %v479_v38, %v483_v37 }
  0xd0   : > { %665 = vmatpush1.bf16.msra.mxu0 %v1998_v7  ;;  %v488_v41 = vrot.slane %v479_v38, %v487_v39 }
  0xd1   : > { %666 = vmatprep.subr.bf16.mxu0 %v1999_v8 }
  0xd4   : > { %667 = vmatpush1.bf16.msra.mxu0 %v2001_v9 }
  0xd5   : > { %668 = vmatprep.subr.bf16.mxu0 %v2002_v10 }
  0xd8   : > { %669 = vmatpush1.bf16.msra.mxu0 %v2004_v11 }
  0xd9   : > { %670 = vmatprep.subr.bf16.mxu0 %v2005_v12 }
  0xdc   : > { %671 = vmatpush1.bf16.msra.mxu0 %v2007_v15 }
  0xdd   : > { %672 = vmatprep.subr.bf16.mxu0 %v2008_v16 }
  0xe0   : > { %673 = vmatpush1.bf16.msra.mxu0 %v2010_v17 }
  0xe1   : > { %674 = vmatprep.subr.bf16.mxu0 %v2011_v18 }
  0xe4   : > { %675 = vmatpush1.bf16.msra.mxu0 %v2013_v19 }
  0xe5   : > { %676 = vmatprep.subr.bf16.mxu0 %v2014_v20 }
  0xe8   : > { %677 = vmatpush1.bf16.msra.mxu0 %v2016_v21 }
  0xe9   : > { %678 = vmatprep.subr.bf16.mxu0 %v2017_v22 }
  0xec   : > { %679 = vmatpush1.bf16.msra.mxu0 %v2019_v23 }
  0xed   : > { %680 = vmatprep.subr.bf16.mxu0 %v2020_v24 }
  0xf0   : > { %681 = vmatpush1.bf16.msra.mxu0 %v2022_v25 }
  0xf1   : > { %682 = vmatprep.subr.bf16.mxu0 %v2023_v26 }
  0xf4   : > { %683 = vmatpush1.bf16.msra.mxu0 %v2025_v27 }
  0xf5   : > { %684 = vmatprep.subr.bf16.mxu0 %v2026_v28 }
  0xf8   : > { %685 = vmatpush1.bf16.msra.mxu0 %v2028_v29 }
  0xf9   : > { %686 = vmatprep.subr.bf16.mxu0 %v2029_v30 }
  0xfc   : > { %687 = vmatpush1.bf16.msra.mxu0 %v2031_v31 }
  0xfd   : > { %688 = vmatprep.subr.bf16.mxu0 %v2032_v32 }
 0x100   : > { %689 = vmatpush1.bf16.msra.mxu0 %v2034_v33 }
 0x103   : > { %691 = vmatmul.mubr.bf16.vlgmr.msra.gmra.mrb[0].mxu0 %v1716_v34 }
 0x1d6   : > { %v692_v42 = vpop.f32.mrb[0].mxu0 }
 0x1d7   : > { %v693_v43 = vadd.f32 %v692_v42, %v484_v40  ;;  %v694_v44 = vpop.f32.mrb[1].mxu0 }
 0x1d8   : > { %v695_v45 = vadd.f32 %v694_v44, %v488_v41  ;;  %v696_v46 = vpop.f32.mrb[2].mxu0 }
 0x1d9   : > { %v699_v47 = vmax.f32 %v693_v43, 0.0  ;;  %v697_v48 = vpop.f32.mrb[3].mxu0 }
 0x1da   : > { %v700_v49 = vmax.f32 %v695_v45, 0.0 }
 0x1dc   : > { %v1863_v50 = vpack.c.bf16 %v700_v49, %v699_v47 }
 0x1de   : > { %709 = vst [vmem:[#allocation2] sm:$0xff] %v1863_v50 }
 0x1df PF: > { %p710_p10 = scmp.ge.s32.totalorder %s2482_s13, 1  ;;  %p711_p4 = scmp.le.s32.totalorder %s2482_s13, 11 }
 0x1e0   : > { %p714_p7 = scmp.ne.s32.totalorder %s2482_s13, 6 }
 0x1e1   : > { %p712_p8 = pnand %p711_p4, %p710_p10 }
 0x1e3   : > { %p713_p1 = pneg %p712_p8 }
 0x1e5   : > { %p715_p5 = pnand %p714_p7, %p713_p1 }
 0x1e6   : > { %v2037_v51 = vld [vmem:[%s2681_s28 + $0x4] ss:$8 sps:$4 sm:$0xff] (!%p715_p5)   ;;  %v2039_v52 = vld [vmem:[%s2681_s28] ss:$8 sps:$4 sm:$0xff] (!%p715_p5)   ;;  %v2040_v53 = vld [vmem:[%s2681_s28 + $0x14] ss:$8 sps:$4 sm:$0xff] (!%p715_p5)   ;;  %v765_v22 = vlaneseq (!%p715_p5) }
 0x1e7   : > { %718 = sbr.rel (%p715_p5) target bundleno = 771 (0x303), region = 84  ;;  %942 = vmatprep.subr.bf16.mxu0 (!%p715_p5), %v2037_v51  ;;  %v2042_v54 = vld [vmem:[%s2681_s28 + $0x10] ss:$8 sps:$4 sm:$0xff] (!%p715_p5)   ;;  %v2043_v55 = vld [vmem:[%s2681_s28 + $0x24] ss:$8 sps:$4 sm:$0xff] (!%p715_p5)   ;;  %p719_p6 = scmp.le.s32.totalorder (!%p715_p5), %s2482_s13, 5 }
 0x1e8   : > { %943 = vmatpush1.bf16.msra.mxu0 (!%p715_p5), %v2039_v52  ;;  %v2045_v56 = vld [vmem:[%s2681_s28 + $0x20] ss:$8 sps:$4 sm:$0xff] (!%p715_p5)   ;;  %v2046_v57 = vld [vmem:[%s2681_s28 + $0x34] ss:$8 sps:$4 sm:$0xff] (!%p715_p5)   ;;  %v2048_v58 = vld [vmem:[%s2681_s28 + $0x30] ss:$8 sps:$4 sm:$0xff] (!%p715_p5)  }
 0x1e9   : > { %944 = vmatprep.subr.bf16.mxu0 (!%p715_p5), %v2040_v53  ;;  %v2049_v59 = vld [vmem:[%s2681_s28 + $0x44] ss:$8 sps:$4 sm:$0xff] (!%p715_p5)   ;;  %v2051_v60 = vld [vmem:[%s2681_s28 + $0x40] ss:$8 sps:$4 sm:$0xff] (!%p715_p5)   ;;  %v2052_v61 = vld [vmem:[%s2681_s28 + $0x54] ss:$8 sps:$4 sm:$0xff] (!%p715_p5)  }
 0x1ea   : > { %v2054_v62 = vld [vmem:[%s2681_s28 + $0x50] ss:$8 sps:$4 sm:$0xff] (!%p715_p5)   ;;  %v2055_v63 = vld [vmem:[%s2681_s28 + $0x64] ss:$8 sps:$4 sm:$0xff] (!%p715_p5)   ;;  %v2057_v2 = vld [vmem:[%s2681_s28 + $0x60] ss:$8 sps:$4 sm:$0xff] (!%p715_p5)  }
 0x1eb   : > { %v722_v0 = vld [vmem:[#allocation2] sm:$0xff] (!%p715_p5)  ;;  %v2061_v5 = vld [vmem:[%s2681_s28 + $0x84] ss:$8 sps:$4 sm:$0xff] (!%p715_p5)   ;;  %v2063_v6 = vld [vmem:[%s2681_s28 + $0x80] ss:$8 sps:$4 sm:$0xff] (!%p715_p5)   ;;  %s720_s30 = sadd.s32 (!%p715_p5), 1, %s2482_s13 }
 0x1ec   : > { %945 = vmatpush1.bf16.msra.mxu0 (!%p715_p5), %v2042_v54  ;;  %v1754_v1 = vcombine.high (!%p715_p5), %v722_v0, %v722_v0  ;;  %v2058_v3 = vld [vmem:[%s2681_s28 + $0x74] ss:$8 sps:$4 sm:$0xff] (!%p715_p5)   ;;  %v2060_v4 = vld [vmem:[%s2681_s28 + $0x70] ss:$8 sps:$4 sm:$0xff] (!%p715_p5)   ;;  %v2067_v9 = vld [vmem:[%s2681_s28 + $0xa4] ss:$8 sps:$4 sm:$0xff] (!%p715_p5)   ;;  %v1753_v21 = vcombine.low (!%p715_p5), %v722_v0, %v722_v0 }
 0x1ed   : > { %946 = vmatprep.subr.bf16.mxu0 (!%p715_p5), %v2043_v55  ;;  %v2064_v7 = vld [vmem:[%s2681_s28 + $0x94] ss:$8 sps:$4 sm:$0xff] (!%p715_p5)   ;;  %v2066_v8 = vld [vmem:[%s2681_s28 + $0x90] ss:$8 sps:$4 sm:$0xff] (!%p715_p5)   ;;  %v2069_v10 = vld [vmem:[%s2681_s28 + $0xa0] ss:$8 sps:$4 sm:$0xff] (!%p715_p5)  }
 0x1ee   : > { %974 = vmatprep.mubr.bf16.mxu0 %v1754_v1  ;;  %v2070_v11 = vld [vmem:[%s2681_s28 + $0xb4] ss:$8 sps:$4 sm:$0xff]   ;;  %v2072_v12 = vld [vmem:[%s2681_s28 + $0xb0] ss:$8 sps:$4 sm:$0xff]   ;;  %v2073_v13 = vld [vmem:[%s2681_s28 + $0xc4] ss:$8 sps:$4 sm:$0xff]   ;;  %s721_s16 = scalar_select %p719_p6, %s2482_s13, %s720_s30 }
 0x1ef   : > { %v2075_v14 = vld [vmem:[%s2681_s28 + $0xc0] ss:$8 sps:$4 sm:$0xff]   ;;  %v2076_v15 = vld [vmem:[%s2681_s28 + $0xd4] ss:$8 sps:$4 sm:$0xff]   ;;  %v2078_v16 = vld [vmem:[%s2681_s28 + $0xd0] ss:$8 sps:$4 sm:$0xff]  }
 0x1f0   : > { %947 = vmatpush1.bf16.msra.mxu0 %v2045_v56  ;;  %v2079_v17 = vld [vmem:[%s2681_s28 + $0xe4] ss:$8 sps:$4 sm:$0xff]   ;;  %v2081_v18 = vld [vmem:[%s2681_s28 + $0xe0] ss:$8 sps:$4 sm:$0xff]   ;;  %v2082_v19 = vld [vmem:[%s2681_s28 + $0xf4] ss:$8 sps:$4 sm:$0xff]  }
 0x1f1   : > { %948 = vmatprep.subr.bf16.mxu0 %v2046_v57  ;;  %v2084_v20 = vld [vmem:[%s2681_s28 + $0xf0] ss:$8 sps:$4 sm:$0xff]   ;;  %s755_s8 = sshra.s32 %s721_s16, 3  ;;  %s758_s22 = sand.u32 7, %s721_s16  ;;  %v766_v23 = vshrl.u32 %v765_v22, 7 }
 0x1f2   : > { %s1864_s24 = sshll.u32 %s755_s8, 4 }
 0x1f3   : > { %s761_s29 = sadd.s32 %s1864_s24, %s758_s22  ;;  %v767_v24 = vsub.s32 0, %v766_v23  ;;  %v771_v26 = vsub.s32 1, %v766_v23 }
 0x1f4   : > { %949 = vmatpush1.bf16.msra.mxu0 %v2048_v58  ;;  %s762_s23 = scalar_lea.vmem [#allocation11], %s761_s29 }
 0x1f5   : > { %950 = vmatprep.subr.bf16.mxu0 %v2049_v59  ;;  %v763_v25 = vld [vmem:[%s762_s23] ss:$8 sm:$0x3] }
 0x1f6   : > { %v768_v27 = vrot.slane %v763_v25, %v767_v24  ;;  %v772_v28 = vrot.slane %v763_v25, %v771_v26 }
 0x1f8   : > { %951 = vmatpush1.bf16.msra.mxu0 %v2051_v60 }
 0x1f9   : > { %952 = vmatprep.subr.bf16.mxu0 %v2052_v61 }
 0x1fc   : > { %953 = vmatpush1.bf16.msra.mxu0 %v2054_v62 }
 0x1fd   : > { %954 = vmatprep.subr.bf16.mxu0 %v2055_v63 }
 0x200   : > { %955 = vmatpush1.bf16.msra.mxu0 %v2057_v2 }
 0x201   : > { %956 = vmatprep.subr.bf16.mxu0 %v2058_v3 }
 0x204   : > { %957 = vmatpush1.bf16.msra.mxu0 %v2060_v4 }
 0x205   : > { %958 = vmatprep.subr.bf16.mxu0 %v2061_v5 }
 0x208   : > { %959 = vmatpush1.bf16.msra.mxu0 %v2063_v6 }
 0x209   : > { %960 = vmatprep.subr.bf16.mxu0 %v2064_v7 }
 0x20c   : > { %961 = vmatpush1.bf16.msra.mxu0 %v2066_v8 }
 0x20d   : > { %962 = vmatprep.subr.bf16.mxu0 %v2067_v9 }
 0x210   : > { %963 = vmatpush1.bf16.msra.mxu0 %v2069_v10 }
 0x211   : > { %964 = vmatprep.subr.bf16.mxu0 %v2070_v11 }
 0x214   : > { %965 = vmatpush1.bf16.msra.mxu0 %v2072_v12 }
 0x215   : > { %966 = vmatprep.subr.bf16.mxu0 %v2073_v13 }
 0x218   : > { %967 = vmatpush1.bf16.msra.mxu0 %v2075_v14 }
 0x219   : > { %968 = vmatprep.subr.bf16.mxu0 %v2076_v15 }
 0x21c   : > { %969 = vmatpush1.bf16.msra.mxu0 %v2078_v16 }
 0x21d   : > { %970 = vmatprep.subr.bf16.mxu0 %v2079_v17 }
 0x220   : > { %971 = vmatpush1.bf16.msra.mxu0 %v2081_v18 }
 0x221   : > { %972 = vmatprep.subr.bf16.mxu0 %v2082_v19 }
 0x224   : > { %973 = vmatpush1.bf16.msra.mxu0 %v2084_v20 }
 0x227   : > { %975 = vmatmul.mubr.bf16.vlgmr.msra.gmra.mrb[0].mxu0 %v1753_v21 }
 0x2fa   : > { %v976_v29 = vpop.f32.mrb[0].mxu0 }
 0x2fb   : > { %v977_v30 = vadd.f32 %v976_v29, %v768_v27  ;;  %v978_v31 = vpop.f32.mrb[1].mxu0 }
 0x2fc   : > { %v979_v32 = vadd.f32 %v978_v31, %v772_v28  ;;  %v980_v33 = vpop.f32.mrb[2].mxu0 }
 0x2fd   : > { %v983_v34 = vmax.f32 %v977_v30, 0.0  ;;  %v981_v35 = vpop.f32.mrb[3].mxu0 }
 0x2fe   : > { %v984_v36 = vmax.f32 %v979_v32, 0.0 }
 0x300   : > { %v1865_v37 = vpack.c.bf16 %v984_v36, %v983_v34 }
 0x302   : > { %993 = vst [vmem:[#allocation2] sm:$0xff] %v1865_v37 }
 0x303 PF: > { %997 = sbr.rel (%p714_p7) target bundleno = 1375 (0x55f), region = 88  ;;  %v2087_v38 = vld [vmem:[#allocation7 + $0x40] sm:$0xff] (!%p714_p7)   ;;  %v2089_v40 = vld [vmem:[#allocation7 + $0x48] sm:$0xff] (!%p714_p7)   ;;  %v2091_v42 = vld [vmem:[#allocation7 + $0x50] sm:$0xff] (!%p714_p7)   ;;  %s2411_s17 = smov (!%p714_p7), 64   ;;  %v2412_v11 = vmov (!%p714_p7), 0   ;;  %v1202_v18 = vlaneseq (!%p714_p7) }
 0x304   : > { %v2088_v39 = vld [vmem:[#allocation7] sm:$0xff] (!%p714_p7)   ;;  %1867 = vmatprep.subr.bf16.mxu0 (!%p714_p7), %v2087_v38  ;;  %v2090_v41 = vld [vmem:[#allocation7 + $0x8] sm:$0xff] (!%p714_p7)   ;;  %v2092_v43 = vld [vmem:[#allocation7 + $0x10] sm:$0xff] (!%p714_p7)   ;;  %s2806_s25 = sld [smem:[#allocation19_spill]] (!%p714_p7)  ;;  %1288 = vmatprep.mubr.bf16.mxu1 (!%p714_p7), %v2412_v11  ;;  %vm1252_vm0 = vcmask (!%p714_p7), 523264  }
 0x305   : > { %1868 = vmatpush3.bf16.msra.mxu0 (!%p714_p7), %v2088_v39  ;;  %v2093_v44 = vld [vmem:[#allocation7 + $0x58] sm:$0xff] (!%p714_p7)   ;;  %v2095_v46 = vld [vmem:[#allocation7 + $0x60] sm:$0xff] (!%p714_p7)   ;;  %v2097_v48 = vld [vmem:[#allocation7 + $0x68] sm:$0xff] (!%p714_p7)   ;;  %v1203_v19 = vshrl.u32 (!%p714_p7), %v1202_v18, 7 }
 0x306   : > { %1869 = vmatprep.subr.bf16.mxu0 (!%p714_p7), %v2089_v40  ;;  %v2094_v45 = vld [vmem:[#allocation7 + $0x18] sm:$0xff] (!%p714_p7)   ;;  %v2096_v47 = vld [vmem:[#allocation7 + $0x20] sm:$0xff] (!%p714_p7)   ;;  %v2098_v52 = vld [vmem:[#allocation7 + $0x28] sm:$0xff] (!%p714_p7)  }
 0x307   : > { %v1179_v50 = vld [vmem:[%s2775_s1] sm:$0xff] (!%p714_p7)  ;;  %v2099_v53 = vld [vmem:[#allocation7 + $0x70] sm:$0xff] (!%p714_p7)   ;;  %v2105_v58 = vld [vmem:[#allocation8 + $0x4] ss:$8 sps:$4 sm:$0xff] (!%p714_p7)   ;;  %v1204_v20 = vsub.s32 (!%p714_p7), 0, %v1203_v19  ;;  %v1208_v22 = vsub.s32 (!%p714_p7), 1, %v1203_v19 }
 0x308   : > { %1181 = vrot.lane.b32.xlu0 (!%p714_p7), %v1179_v50, %s2411_s17  ;;  %v2100_v54 = vld [vmem:[#allocation7 + $0x30] sm:$0xff] (!%p714_p7)   ;;  %v2101_v55 = vld [vmem:[#allocation7 + $0x78] sm:$0xff] (!%p714_p7)   ;;  %v2107_v59 = vld [vmem:[#allocation8] ss:$8 sps:$4 sm:$0xff] (!%p714_p7)   ;;  %1256 = vmatprep.subr.bf16.mxu1 (!%p714_p7), %v2105_v58 }
 0x309   : > { %1870 = vmatpush3.bf16.msra.mxu0 (!%p714_p7), %v2090_v41  ;;  %v998_v49 = vld [vmem:[#allocation2] sm:$0xff] (!%p714_p7)  ;;  %1257 = vmatpush1.bf16.msra.mxu1 (!%p714_p7), %v2107_v59  ;;  %v2111_v62 = vld [vmem:[#allocation8 + $0x24] ss:$8 sps:$4 sm:$0xff] (!%p714_p7)   ;;  %v2113_v63 = vld [vmem:[#allocation8 + $0x20] ss:$8 sps:$4 sm:$0xff] (!%p714_p7)  }
 0x30a   : > { %1871 = vmatprep.subr.bf16.mxu0 %v2091_v42  ;;  %v1790_v51 = vcombine.high %v998_v49, %v998_v49  ;;  %v2102_v56 = vld [vmem:[#allocation7 + $0x38] sm:$0xff]   ;;  %v1789_v57 = vcombine.low %v998_v49, %v998_v49  ;;  %v1031_v1 = vld [vmem:[#allocation11 + $0x6] ss:$0 sm:$0xff]  ;;  %v1200_v21 = vld [vmem:[#allocation11 + $0x7] ss:$8 sm:$0x3] }
 0x30b   : > { %v2108_v60 = vld [vmem:[#allocation8 + $0x14] ss:$8 sps:$4 sm:$0xff]   ;;  %v2110_v61 = vld [vmem:[#allocation8 + $0x10] ss:$8 sps:$4 sm:$0xff]   ;;  %v1205_v23 = vrot.slane %v1200_v21, %v1204_v20  ;;  %v1209_v24 = vrot.slane %v1200_v21, %v1208_v22 }
 0x30c   : > { %1167 = vmatprep.mubr.bf16.mxu0 %v1790_v51  ;;  %1258 = vmatprep.subr.bf16.mxu1 %v2108_v60  ;;  %v2114_v9 = vld [vmem:[#allocation8 + $0x34] ss:$8 sps:$4 sm:$0xff]   ;;  %v2116_v10 = vld [vmem:[#allocation8 + $0x30] ss:$8 sps:$4 sm:$0xff]  }
 0x30d   : > { %1872 = vmatpush3.bf16.msra.mxu0 %v2092_v43  ;;  %1259 = vmatpush1.bf16.msra.mxu1 %v2110_v61 }
 0x30e   : > { %1873 = vmatprep.subr.bf16.mxu0 %v2093_v44  ;;  %1260 = vmatprep.subr.bf16.mxu1 %v2111_v62 }
 0x311   : > { %1874 = vmatpush3.bf16.msra.mxu0 %v2094_v45  ;;  %1261 = vmatpush1.bf16.msra.mxu1 %v2113_v63 }
 0x312   : > { %1875 = vmatprep.subr.bf16.mxu0 %v2095_v46  ;;  %1262 = vmatprep.subr.bf16.mxu1 %v2114_v9 }
 0x315   : > { %1876 = vmatpush3.bf16.msra.mxu0 %v2096_v47  ;;  %1263 = vmatpush1.bf16.msra.mxu1 %v2116_v10 }
 0x316   : > { %1877 = vmatprep.subr.bf16.mxu0 %v2097_v48 }
 0x319   : > { %1878 = vmatpush3.bf16.msra.mxu0 %v2098_v52 }
 0x31a   : > { %1879 = vmatprep.subr.bf16.mxu0 %v2099_v53 }
 0x31d   : > { %1880 = vmatpush3.bf16.msra.mxu0 %v2100_v54 }
 0x31e   : > { %1881 = vmatprep.subr.bf16.mxu0 %v2101_v55 }
 0x321   : > { %1882 = vmatpush3.bf16.msra.mxu0 %v2102_v56 }
 0x324   : > { %1168 = vmatmul.mubr.bf16.vlgmr.msra.gmra.mrb[0].mxu0 %v1789_v57 }
 0x37a   : > { %v1182_v12 = vpop.permute.xlu0 %1181 }
 0x3f7   : > { %v1883_v0 = vpop.f32.mrb[0].mxu0 }
 0x3f8   : > { %v1884_v2 = vpop.f32.mrb[1].mxu0 }
 0x3f9   : > { %v1885_v3 = vadd.f32 %v1884_v2, %v1883_v0  ;;  %v1886_v4 = vpop.f32.mrb[2].mxu0 }
 0x3fa   : > { %v1887_v5 = vpop.f32.mrb[3].mxu0 }
 0x3fb   : > { %v1170_v6 = vadd.f32 %v1885_v3, %v1031_v1 }
 0x3fd   : > { %1175 = vst [vmem:[%s2806_s25] sm:$0xff] %v1170_v6  ;;  %v1176_v7 = vmul.f32 0.5, %v1170_v6 }
 0x3ff   : > { %v1177_v8 = vmul.f32 1.442695, %v1176_v7 }
 0x401   : > { %2117 = vpow2.f32 %v1177_v8 }
 0x40b   : > { %v2118_v13 = vpop.eup %2117 }
 0x40c   : > { %v1184_v14 = vmul.f32 %v2118_v13, %v1182_v12 }
 0x40e   : > { %1186 = vrot.lane.b32.xlu0 %v1184_v14, %s2411_s17 }
 0x480   : > { %v1187_v15 = vpop.permute.xlu0 %1186 }
 0x481   : > { %v1189_v16 = vadd.f32 %v1187_v15, %v1170_v6 }
 0x483   : > { %v1190_v17 = vpack.c.bf16 %v1189_v16, %v1189_v16 }
 0x485   : > { %1815 = vmatmul.mubr.msk.bf16.vlgmr.msra.gmra.mrb[0].mxu1 %vm1252_vm0, %v1190_v17 }
 0x558   : > { %v1290_v25 = vpop.f32.mrb[0].mxu1 }
 0x559   : > { %v1291_v26 = vadd.f32 %v1290_v25, %v1205_v23  ;;  %v1292_v27 = vpop.f32.mrb[1].mxu1 }
 0x55a   : > { %v1293_v28 = vadd.f32 %v1292_v27, %v1209_v24  ;;  %v1294_v29 = vpop.f32.mrb[2].mxu1 }
 0x55b   : > { %v1295_v30 = vpop.f32.mrb[3].mxu1 }
 0x55c   : > { %v1866_v31 = vpack.c.bf16 %v1293_v28, %v1291_v26 }
 0x55e   : > { %1305 = vst [vmem:[#allocation2] sm:$0xff] %v1866_v31 }
 0x55f PF: > { %p1817_p2 = scmp.ne.s32.totalorder %s2482_s13, 12 }
 0x560   : > { %v2119_v32 = vld [vmem:[#allocation10 + $0x4] ss:$8 sps:$4 sm:$0xff] (!%p1817_p2)   ;;  %v2121_v33 = vld [vmem:[#allocation10] ss:$8 sps:$4 sm:$0xff] (!%p1817_p2)   ;;  %v2122_v34 = vld [vmem:[#allocation10 + $0x14] ss:$8 sps:$4 sm:$0xff] (!%p1817_p2)   ;;  %v1346_v3 = vlaneseq (!%p1817_p2) }
 0x561   : > { %1309 = sbr.rel (%p1817_p2) target bundleno = 1683 (0x693), region = 92  ;;  %1523 = vmatprep.subr.bf16.mxu0 (!%p1817_p2), %v2119_v32  ;;  %v2124_v35 = vld [vmem:[#allocation10 + $0x10] ss:$8 sps:$4 sm:$0xff] (!%p1817_p2)   ;;  %v2125_v36 = vld [vmem:[#allocation10 + $0x24] ss:$8 sps:$4 sm:$0xff] (!%p1817_p2)   ;;  %s2807_s21 = sld [smem:[#allocation18_spill]] (!%p1817_p2) }
 0x562   : > { %1524 = vmatpush1.bf16.msra.mxu0 (!%p1817_p2), %v2121_v33  ;;  %v2127_v37 = vld [vmem:[#allocation10 + $0x20] ss:$8 sps:$4 sm:$0xff] (!%p1817_p2)   ;;  %v2128_v38 = vld [vmem:[#allocation10 + $0x34] ss:$8 sps:$4 sm:$0xff] (!%p1817_p2)   ;;  %v2130_v39 = vld [vmem:[#allocation10 + $0x30] ss:$8 sps:$4 sm:$0xff] (!%p1817_p2)  }
 0x563   : > { %1525 = vmatprep.subr.bf16.mxu0 (!%p1817_p2), %v2122_v34  ;;  %v2131_v40 = vld [vmem:[#allocation10 + $0x44] ss:$8 sps:$4 sm:$0xff] (!%p1817_p2)   ;;  %v2133_v41 = vld [vmem:[#allocation10 + $0x40] ss:$8 sps:$4 sm:$0xff] (!%p1817_p2)   ;;  %v2134_v42 = vld [vmem:[#allocation10 + $0x54] ss:$8 sps:$4 sm:$0xff] (!%p1817_p2)  }
 0x564   : > { %v2136_v43 = vld [vmem:[#allocation10 + $0x50] ss:$8 sps:$4 sm:$0xff] (!%p1817_p2)   ;;  %v2137_v44 = vld [vmem:[#allocation10 + $0x64] ss:$8 sps:$4 sm:$0xff] (!%p1817_p2)   ;;  %v2139_v47 = vld [vmem:[#allocation10 + $0x60] ss:$8 sps:$4 sm:$0xff] (!%p1817_p2)  }
 0x565   : > { %v1310_v45 = vld [vmem:[#allocation2] sm:$0xff] (!%p1817_p2)  ;;  %v2143_v50 = vld [vmem:[#allocation10 + $0x84] ss:$8 sps:$4 sm:$0xff] (!%p1817_p2)   ;;  %v2145_v51 = vld [vmem:[#allocation10 + $0x80] ss:$8 sps:$4 sm:$0xff] (!%p1817_p2)   ;;  %v1347_v4 = vshrl.u32 (!%p1817_p2), %v1346_v3, 7 }
 0x566   : > { %1526 = vmatpush1.bf16.msra.mxu0 (!%p1817_p2), %v2124_v35  ;;  %v1819_v46 = vcombine.high (!%p1817_p2), %v1310_v45, %v1310_v45  ;;  %v2140_v48 = vld [vmem:[#allocation10 + $0x74] ss:$8 sps:$4 sm:$0xff] (!%p1817_p2)   ;;  %v2142_v49 = vld [vmem:[#allocation10 + $0x70] ss:$8 sps:$4 sm:$0xff] (!%p1817_p2)   ;;  %v2149_v54 = vld [vmem:[#allocation10 + $0xa4] ss:$8 sps:$4 sm:$0xff] (!%p1817_p2)   ;;  %v1818_v2 = vcombine.low (!%p1817_p2), %v1310_v45, %v1310_v45 }
 0x567   : > { %1527 = vmatprep.subr.bf16.mxu0 (!%p1817_p2), %v2125_v36  ;;  %v2146_v52 = vld [vmem:[#allocation10 + $0x94] ss:$8 sps:$4 sm:$0xff] (!%p1817_p2)   ;;  %v2148_v53 = vld [vmem:[#allocation10 + $0x90] ss:$8 sps:$4 sm:$0xff] (!%p1817_p2)   ;;  %v2151_v55 = vld [vmem:[#allocation10 + $0xa0] ss:$8 sps:$4 sm:$0xff] (!%p1817_p2)  }
 0x568   : > { %1555 = vmatprep.mubr.bf16.mxu0 %v1819_v46  ;;  %v2152_v56 = vld [vmem:[#allocation10 + $0xb4] ss:$8 sps:$4 sm:$0xff]   ;;  %v2154_v57 = vld [vmem:[#allocation10 + $0xb0] ss:$8 sps:$4 sm:$0xff]   ;;  %v2155_v58 = vld [vmem:[#allocation10 + $0xc4] ss:$8 sps:$4 sm:$0xff]  }
 0x569   : > { %v2157_v59 = vld [vmem:[#allocation10 + $0xc0] ss:$8 sps:$4 sm:$0xff]   ;;  %v2158_v60 = vld [vmem:[#allocation10 + $0xd4] ss:$8 sps:$4 sm:$0xff]   ;;  %v2160_v61 = vld [vmem:[#allocation10 + $0xd0] ss:$8 sps:$4 sm:$0xff]  }
 0x56a   : > { %1528 = vmatpush1.bf16.msra.mxu0 %v2127_v37  ;;  %v2161_v62 = vld [vmem:[#allocation10 + $0xe4] ss:$8 sps:$4 sm:$0xff]   ;;  %v2163_v63 = vld [vmem:[#allocation10 + $0xe0] ss:$8 sps:$4 sm:$0xff]   ;;  %v2164_v0 = vld [vmem:[#allocation10 + $0xf4] ss:$8 sps:$4 sm:$0xff]  }
 0x56b   : > { %1529 = vmatprep.subr.bf16.mxu0 %v2128_v38  ;;  %v2166_v1 = vld [vmem:[#allocation10 + $0xf0] ss:$8 sps:$4 sm:$0xff]   ;;  %v1348_v5 = vsub.s32 0, %v1347_v4  ;;  %v1344_v6 = vld [vmem:[#allocation11 + $0x15] ss:$8 sm:$0x3] }
 0x56c   : > { %v1352_v7 = vsub.s32 1, %v1347_v4 }
 0x56d   : > { %v1349_v8 = vrot.slane %v1344_v6, %v1348_v5 }
 0x56e   : > { %1530 = vmatpush1.bf16.msra.mxu0 %v2130_v39  ;;  %v1353_v9 = vrot.slane %v1344_v6, %v1352_v7 }
 0x56f   : > { %1531 = vmatprep.subr.bf16.mxu0 %v2131_v40 }
 0x572   : > { %1532 = vmatpush1.bf16.msra.mxu0 %v2133_v41 }
 0x573   : > { %1533 = vmatprep.subr.bf16.mxu0 %v2134_v42 }
 0x576   : > { %1534 = vmatpush1.bf16.msra.mxu0 %v2136_v43 }
 0x577   : > { %1535 = vmatprep.subr.bf16.mxu0 %v2137_v44 }
 0x57a   : > { %1536 = vmatpush1.bf16.msra.mxu0 %v2139_v47 }
 0x57b   : > { %1537 = vmatprep.subr.bf16.mxu0 %v2140_v48 }
 0x57e   : > { %1538 = vmatpush1.bf16.msra.mxu0 %v2142_v49 }
 0x57f   : > { %1539 = vmatprep.subr.bf16.mxu0 %v2143_v50 }
 0x582   : > { %1540 = vmatpush1.bf16.msra.mxu0 %v2145_v51 }
 0x583   : > { %1541 = vmatprep.subr.bf16.mxu0 %v2146_v52 }
 0x586   : > { %1542 = vmatpush1.bf16.msra.mxu0 %v2148_v53 }
 0x587   : > { %1543 = vmatprep.subr.bf16.mxu0 %v2149_v54 }
 0x58a   : > { %1544 = vmatpush1.bf16.msra.mxu0 %v2151_v55 }
 0x58b   : > { %1545 = vmatprep.subr.bf16.mxu0 %v2152_v56 }
 0x58e   : > { %1546 = vmatpush1.bf16.msra.mxu0 %v2154_v57 }
 0x58f   : > { %1547 = vmatprep.subr.bf16.mxu0 %v2155_v58 }
 0x592   : > { %1548 = vmatpush1.bf16.msra.mxu0 %v2157_v59 }
 0x593   : > { %1549 = vmatprep.subr.bf16.mxu0 %v2158_v60 }
 0x596   : > { %1550 = vmatpush1.bf16.msra.mxu0 %v2160_v61 }
 0x597   : > { %1551 = vmatprep.subr.bf16.mxu0 %v2161_v62 }
 0x59a   : > { %1552 = vmatpush1.bf16.msra.mxu0 %v2163_v63 }
 0x59b   : > { %1553 = vmatprep.subr.bf16.mxu0 %v2164_v0 }
 0x59e   : > { %1554 = vmatpush1.bf16.msra.mxu0 %v2166_v1 }
 0x5a1   : > { %1556 = vmatmul.mubr.bf16.vlgmr.msra.gmra.mrb[0].mxu0 %v1818_v2 }
 0x674   : > { %v1557_v10 = vpop.f32.mrb[0].mxu0 }
 0x675   : > { %v1558_v11 = vadd.f32 %v1557_v10, %v1349_v8  ;;  %v1559_v12 = vpop.f32.mrb[1].mxu0 }
 0x676   : > { %v1560_v13 = vadd.f32 %v1559_v12, %v1353_v9  ;;  %v1561_v14 = vpop.f32.mrb[2].mxu0 }
 0x677   : > { %v1852_v15 = vmul.f32 -1.442695, %v1558_v11  ;;  %v1562_v16 = vpop.f32.mrb[3].mxu0 }
 0x678   : > { %v1853_v17 = vmul.f32 -1.442695, %v1560_v13 }
 0x679   : > { %2169 = vpow2.f32 %v1852_v15 }
 0x67a   : > { %2171 = vpow2.f32 %v1853_v17 }
 0x683   : > { %v2170_v18 = vpop.eup %2169 }
 0x684   : > { %v2172_v19 = vpop.eup %2171  ;;  %v1570_v20 = vadd.f32 1.0, %v2170_v18 }
 0x685   : > { %v1571_v21 = vadd.f32 1.0, %v2172_v19 }
 0x686   : > { %2173 = vrcp.f32 %v1570_v20 }
 0x687   : > { %2175 = vrcp.f32 %v1571_v21 }
 0x690   : > { %v2174_v22 = vpop.eup %2173 }
 0x691   : > { %v2176_v23 = vpop.eup %2175  ;;  %1576 = vst [vmem:[%s2807_s21] sm:$0xff] %v2174_v22 }
 0x692   : > { %1577 = vst [vmem:[%s2807_s21 + $0x8] sm:$0xff] %v2176_v23 }
 0x693 PF: > { %p23_p9 = scmp.ge.s32.totalorder %s2613_s26, 15   ;;  %s2808_s30 = smov %s2389_s10 }
 0x694   : > { %s2809_s10 = smov %s2393_s11  ;;  %s2810_s11 = smov %s2629_s20 }
 0x695   : > { %s2811_s12 = smov %s2613_s26  ;;  %25 = sbr.rel (!%p23_p9) target bundleno = 9 (0x9), region = 136 }
 0x69c   :  { %1595 = vsyncpa [#allocation4], 1 }
 0x69d   :  { %1597 = vsyncpa [#allocation4 + $0x1], 1 }
 0x69e   :  { %1598 = vsyncpa [#allocation6], 1 }
 0x69f   :  { %1600 = vsyncpa [#allocation6 + $0x1], 1 }
 0x6a0   :  { %1601 = vsyncpa [#allocation9], 1 }
 0x6a1   :  { %1602 = vsyncpa [#allocation12], 1 }

</bundles_post_ra>
